<compile_context>
chip_gen: v6e
topology: v6e:2x2x1
jax: 0.10.0
libtpu: 0.0.40
codegen_flags: <defaults>
</compile_context>

<pallas_src>
import functools

import jax
import jax.numpy as jnp
from jax.experimental import pallas as pl
from jax.experimental.pallas import tpu as pltpu


def _vote_kernel(xyz_ref, feat_ref, w1_ref, b1_ref, w2_ref, misc_ref, out_ref,
                 *, bb):
    # xyz_ref : (bb, 3, TN)      feat_ref : (bb, Cin, TN)   (f32 or bf16)
    # w1_ref  : (Cmid, Cin)      BN scale folded in, same dtype as features
    # b1_ref  : (Cmid, 1) f32    folded BN bias
    # w2_ref  : (3, Cmid) f32    misc_ref : (3, 2) f32  [:,0]=conv bias [:,1]=limit
    # out_ref : (bb, 6, TN) f32  rows 0-2 = vote_xyz, rows 3-5 = unclamped offsets
    w1 = w1_ref[...]
    b1 = b1_ref[...]
    w2 = w2_ref[...]
    b2 = misc_ref[:, 0:1]
    lim = misc_ref[:, 1:2]
    for b in range(bb):                                   # static unroll, bb small
        x = feat_ref[b]                                   # (Cin, TN)
        # shared MLP: 1x1 conv (BN scale pre-folded) -> +bias -> ReLU (MXU + VPU)
        h = jnp.dot(w1, x, preferred_element_type=jnp.float32)   # (Cmid, TN)
        h = jnp.maximum(h + b1, 0.0)
        # ctr_reg: 1x1 conv (+bias) -> 3 offset channels, lane-dense
        off = jnp.dot(w2, h, preferred_element_type=jnp.float32) + b2  # (3, TN)
        # clamp to +/- max_translate_range (torch.where pair, matches reference)
        off_c = jnp.where(off > lim, lim, off)
        off_c = jnp.where(off_c < -lim, -lim, off_c)
        out_ref[b, 0:3, :] = (xyz_ref[b] + off_c).astype(out_ref.dtype)
        out_ref[b, 3:6, :] = off.astype(out_ref.dtype)    # unclamped offsets


def _round_up(x, m):
    return ((x + m - 1) // m) * m


def _largest_divisor_leq(n, cap):
    cap = max(1, min(n, cap))
    for d in range(cap, 0, -1):
        if n % d == 0:
            return d
    return 1


def vote_layer_forward(xyz, features, params):
    """xyz: [B, N, 3] f32; features: [B, Cin, N] (f32 or bf16, channels-first).

    Features are DMA'd in whatever dtype they arrive in (no wrapper cast/pad);
    keep them bf16 upstream if you want bf16 HBM traffic.
    """
    B, N, _ = xyz.shape
    Cin = features.shape[1]
    w1f, b1, w2, b2, limit = params
    Cmid = w1f.shape[0]

    feat_dtype = features.dtype
    # Tiny operands only: cast w1 to the features dtype (so the big matmul runs
    # in that dtype on the MXU) and pack conv bias + clamp limit into one (3, 2).
    w1_k = w1f.astype(feat_dtype)
    misc = jnp.stack([b2, limit], axis=1).astype(jnp.float32)     # (3, 2)
    xyz_cf = jnp.transpose(xyz, (0, 2, 1)).astype(jnp.float32)    # (B, 3, N) tiny

    # ---- tile selection: ~4 MiB of features per grid step -------------------
    LANE = 128
    TARGET_BLOCK_BYTES = 4 << 20
    bpp = Cin * jnp.dtype(feat_dtype).itemsize                    # bytes / point
    target_pts = max(LANE, (TARGET_BLOCK_BYTES // bpp) // LANE * LANE)

    n_ceil = _round_up(N, LANE)
    tn = min(n_ceil, target_pts)          # multiple of 128; ragged tail is OK
    bb = 1
    if tn == n_ceil and B > 1:
        # N fits in one tile -> block several point clouds per grid step.
        bb = _largest_divisor_leq(B, min(16, max(1, target_pts // n_ceil)))
    b_tiles = B // bb
    n_tiles = pl.cdiv(N, tn)
    # v7x has two TensorCores: ensure >= 2 parallel programs when possible.
    if b_tiles * n_tiles < 2:
        if B >= 2:
            bb = _largest_divisor_leq(B, (B + 1) // 2)
            b_tiles = B // bb
        elif n_ceil >= 2 * LANE:
            tn = _round_up(-(-n_ceil // 2), LANE)
            n_tiles = pl.cdiv(N, tn)

    bn_map = lambda b, n: (b, 0, n)
    const_map = lambda b, n: (0, 0)

    itemsize = jnp.dtype(feat_dtype).itemsize
    cost = pl.CostEstimate(
        flops=2 * B * N * Cmid * (Cin + 3),
        transcendentals=0,
        bytes_accessed=int(B * Cin * N * itemsize + B * 3 * N * 4 + B * 6 * N * 4),
    )

    out_cf = pl.pallas_call(
        functools.partial(_vote_kernel, bb=bb),
        out_shape=jax.ShapeDtypeStruct((B, 6, N), jnp.float32),
        grid_spec=pltpu.PrefetchScalarGridSpec(
            num_scalar_prefetch=0,
            grid=(b_tiles, n_tiles),
            in_specs=[
                pl.BlockSpec((bb, 3, tn), bn_map),        # xyz (channels-first)
                pl.BlockSpec((bb, Cin, tn), bn_map),      # features (as-is dtype)
                pl.BlockSpec((Cmid, Cin), const_map),     # w1 (BN folded)
                pl.BlockSpec((Cmid, 1), const_map),       # folded BN bias column
                pl.BlockSpec((3, Cmid), const_map),       # w2
                pl.BlockSpec((3, 2), const_map),          # [b2 | limit]
            ],
            out_specs=pl.BlockSpec((bb, 6, tn), bn_map),  # [vote_xyz ; ctr_off]
        ),
        compiler_params=pltpu.CompilerParams(
            dimension_semantics=("parallel", "parallel")),
        cost_estimate=cost,
    )(xyz_cf, features, w1_k, b1, w2, misc)

    # Single small transpose back to the module's [B, N, C] output layout.
    out_pts = jnp.transpose(out_cf, (0, 2, 1))            # (B, N, 6)
    vote_xyz = out_pts[..., 0:3]
    ctr_offsets = out_pts[..., 3:6]
    # new_features = ctr_offsets[..., 3:] -> empty [B, N, 0] (plain-JAX glue)
    new_features = jnp.zeros((B, N, 0), dtype=jnp.float32)
    return vote_xyz, new_features, xyz, ctr_offsets


def _reference(xyz, features_cf, params):
    w1f, b1, w2, b2, limit = params
    hp = jax.lax.Precision.HIGHEST
    h = jnp.maximum(
        jnp.einsum('mc,bcn->bmn', w1f, features_cf, precision=hp) + b1[None], 0.0)
    off = jnp.einsum('km,bmn->bkn', w2, h, precision=hp) + b2.reshape(1, 3, 1)
    lim = limit.reshape(1, 3, 1)
    off_c = jnp.clip(off, -lim, lim)
    vote = jnp.transpose(xyz, (0, 2, 1)) + off_c
    return jnp.transpose(vote, (0, 2, 1)), jnp.transpose(off, (0, 2, 1))


def make_params(key, c_in, c_mid, max_translate_range):
    k1, k2, k3, k4, k5, k6 = jax.random.split(key, 6)
    # Conv1d(c_in, c_mid, k=1, bias=False): weight [c_mid, c_in, 1] -> [c_mid, c_in]
    w1 = 0.1 * jax.random.normal(k1, (c_mid, c_in), jnp.float32)
    # BatchNorm1d(c_mid), eval mode, folded into the conv weight + bias column
    gamma = 1.0 + 0.1 * jax.random.normal(k2, (c_mid,), jnp.float32)
    beta = 0.1 * jax.random.normal(k3, (c_mid,), jnp.float32)
    run_mean = 0.05 * jax.random.normal(k4, (c_mid,), jnp.float32)
    run_var = jnp.abs(jax.random.normal(k5, (c_mid,), jnp.float32)) + 0.5
    eps = 1e-5
    scale = gamma / jnp.sqrt(run_var + eps)
    w1_folded = w1 * scale[:, None]                        # (c_mid, c_in)
    b1 = (beta - run_mean * scale)[:, None]                # (c_mid, 1)
    # ctr_reg = Conv1d(c_mid, 3, k=1, bias=True): weight [3, c_mid, 1] -> [3, c_mid]
    w2 = 0.1 * jax.random.normal(k6, (3, c_mid), jnp.float32)
    b2 = jnp.array([0.05, -0.05, 0.02], jnp.float32)
    limit = jnp.asarray(max_translate_range, jnp.float32)
    return (w1_folded, b1, w2, b2, limit)


if __name__ == "__main__":
    B, N, C_IN = 2, 128, 64
    MLP_LIST = [32]                       # Vote_layer(mlp_list=[32], pre_channel=64, ...)
    MAX_TRANSLATE_RANGE = [3.0, 3.0, 2.0]

    key = jax.random.PRNGKey(0)
    kx, kf, kp = jax.random.split(key, 3)
    xyz = jax.random.normal(kx, (B, N, 3), jnp.float32) * 10.0
    features = jax.random.normal(kf, (B, C_IN, N), jnp.float32)   # PyTorch [B, C, N]
    params = make_params(kp, C_IN, MLP_LIST[0], MAX_TRANSLATE_RANGE)

    # f32-features path (tight check)
    ref_vote, ref_off = _reference(xyz, features, params)
    vote_xyz, new_features, xyz_select, ctr_offsets = jax.block_until_ready(
        vote_layer_forward(xyz, features, params))
    assert vote_xyz.shape == (B, N, 3)
    assert new_features.shape == (B, N, 0)
    assert xyz_select.shape == (B, N, 3)
    assert ctr_offsets.shape == (B, N, 3)
    assert jnp.allclose(vote_xyz, ref_vote, atol=1e-3, rtol=1e-3)
    assert jnp.allclose(ctr_offsets, ref_off, atol=1e-3, rtol=1e-3)

    # bf16-upstream path (features already stored bf16 in HBM; no wrapper cast)
    features_bf16 = features.astype(jnp.bfloat16)
    ref_vote_b, ref_off_b = _reference(xyz, features_bf16.astype(jnp.float32), params)
    vote_b, _, _, off_b = jax.block_until_ready(
        vote_layer_forward(xyz, features_bf16, params))
    assert jnp.allclose(vote_b, ref_vote_b, atol=1e-1, rtol=1e-2)
    assert jnp.allclose(off_b, ref_off_b, atol=1e-1, rtol=1e-2)

    print("KERNEL_OK")
</pallas_src>

<mosaic_0001>
module attributes {stable_mosaic.version = 11 : i64} {
  func.func @_vote_kernel(%arg0: i32, %arg1: i32, %arg2: memref<1x3x128xf32, #tpu.memory_space<vmem>>, %arg3: memref<1x64x128xf32, #tpu.memory_space<vmem>>, %arg4: memref<32x64xf32, #tpu.memory_space<vmem>>, %arg5: memref<32x1xf32, #tpu.memory_space<vmem>>, %arg6: memref<3x32xf32, #tpu.memory_space<vmem>>, %arg7: memref<3x2xf32, #tpu.memory_space<vmem>>, %arg8: memref<1x6x128xf32, #tpu.memory_space<vmem>>) attributes {dimension_semantics = [#tpu.dimension_semantics<parallel>, #tpu.dimension_semantics<parallel>], iteration_bounds = array<i64: 2, 1>, scalar_prefetch = 0 : i64, scratch_operands = 0 : i64, tpu.core_type = #tpu.core_type<tc>, window_params = [{transform_indices = @transform_0, window_bounds = array<i64: 1, 3, 128>}, {transform_indices = @transform_1, window_bounds = array<i64: 1, 64, 128>}, {pipeline_mode = #tpu.pipeline_mode<synchronous>, transform_indices = @transform_2, window_bounds = array<i64: 32, 64>}, {pipeline_mode = #tpu.pipeline_mode<synchronous>, transform_indices = @transform_3, window_bounds = array<i64: 32, 1>}, {pipeline_mode = #tpu.pipeline_mode<synchronous>, transform_indices = @transform_4, window_bounds = array<i64: 3, 32>}, {pipeline_mode = #tpu.pipeline_mode<synchronous>, transform_indices = @transform_5, window_bounds = array<i64: 3, 2>}, {transform_indices = @transform_6, window_bounds = array<i64: 1, 6, 128>}]} {
    %c0 = arith.constant 0 : index
    %c0_0 = arith.constant 0 : index
    %0 = vector.load %arg4[%c0, %c0_0] : memref<32x64xf32, #tpu.memory_space<vmem>>, vector<32x64xf32>
    %c0_1 = arith.constant 0 : index
    %c0_2 = arith.constant 0 : index
    %1 = vector.load %arg5[%c0_1, %c0_2] : memref<32x1xf32, #tpu.memory_space<vmem>>, vector<32x1xf32>
    %c0_3 = arith.constant 0 : index
    %c0_4 = arith.constant 0 : index
    %2 = vector.load %arg6[%c0_3, %c0_4] : memref<3x32xf32, #tpu.memory_space<vmem>>, vector<3x32xf32>
    %c0_5 = arith.constant 0 : index
    %c0_6 = arith.constant 0 : index
    %3 = vector.load %arg7[%c0_5, %c0_6] : memref<3x2xf32, #tpu.memory_space<vmem>>, vector<3x1xf32>
    %c0_7 = arith.constant 0 : index
    %c1 = arith.constant 1 : index
    %4 = vector.load %arg7[%c0_7, %c1] : memref<3x2xf32, #tpu.memory_space<vmem>>, vector<3x1xf32>
    %c0_8 = arith.constant 0 : index
    %c0_9 = arith.constant 0 : index
    %c0_10 = arith.constant 0 : index
    %5 = vector.load %arg3[%c0_8, %c0_9, %c0_10] : memref<1x64x128xf32, #tpu.memory_space<vmem>>, vector<1x64x128xf32>
    %6 = vector.shape_cast %5 : vector<1x64x128xf32> to vector<64x128xf32>
    %cst = arith.constant dense<0.000000e+00> : vector<32x128xf32>
    %7 = tpu.matmul %0, %6, %cst {dimension_numbers = #tpu.dot_dimension_numbers<[1], [0], [0], [1], [0, 0, 1, 1], [], []>} : vector<32x64xf32>, vector<64x128xf32>, vector<32x128xf32> -> vector<32x128xf32>
    %8 = vector.broadcast %1 : vector<32x1xf32> to vector<32x128xf32>
    %9 = arith.addf %7, %8 : vector<32x128xf32>
    %cst_11 = arith.constant 0.000000e+00 : f32
    %10 = vector.broadcast %cst_11 : f32 to vector<32x128xf32>
    %11 = arith.maximumf %9, %10 : vector<32x128xf32>
    %cst_12 = arith.constant dense<0.000000e+00> : vector<3x128xf32>
    %12 = tpu.matmul %2, %11, %cst_12 {dimension_numbers = #tpu.dot_dimension_numbers<[1], [0], [0], [1], [0, 0, 1, 1], [], []>} : vector<3x32xf32>, vector<32x128xf32>, vector<3x128xf32> -> vector<3x128xf32>
    %13 = vector.broadcast %3 : vector<3x1xf32> to vector<3x128xf32>
    %14 = arith.addf %12, %13 : vector<3x128xf32>
    %15 = vector.broadcast %4 : vector<3x1xf32> to vector<3x128xf32>
    %16 = arith.cmpf ogt, %14, %15 : vector<3x128xf32>
    %17 = vector.shape_cast %4 : vector<3x1xf32> to vector<3x1xf32>
    %18 = vector.broadcast %17 : vector<3x1xf32> to vector<3x128xf32>
    %19 = arith.select %16, %18, %14 : vector<3x128xi1>, vector<3x128xf32>
    %cst_13 = arith.constant 0.000000e+00 : f32
    %20 = vector.broadcast %cst_13 : f32 to vector<3x1xf32>
    %21 = arith.subf %20, %4 : vector<3x1xf32>
    %22 = vector.broadcast %21 : vector<3x1xf32> to vector<3x128xf32>
    %23 = arith.cmpf olt, %19, %22 : vector<3x128xf32>
    %cst_14 = arith.constant 0.000000e+00 : f32
    %24 = vector.broadcast %cst_14 : f32 to vector<3x1xf32>
    %25 = arith.subf %24, %4 : vector<3x1xf32>
    %26 = vector.shape_cast %25 : vector<3x1xf32> to vector<3x1xf32>
    %27 = vector.broadcast %26 : vector<3x1xf32> to vector<3x128xf32>
    %28 = arith.select %23, %27, %19 : vector<3x128xi1>, vector<3x128xf32>
    %c0_15 = arith.constant 0 : index
    %c0_16 = arith.constant 0 : index
    %c0_17 = arith.constant 0 : index
    %29 = vector.load %arg2[%c0_15, %c0_16, %c0_17] : memref<1x3x128xf32, #tpu.memory_space<vmem>>, vector<1x3x128xf32>
    %30 = vector.shape_cast %29 : vector<1x3x128xf32> to vector<3x128xf32>
    %31 = arith.addf %30, %28 : vector<3x128xf32>
    %c0_18 = arith.constant 0 : index
    %c0_19 = arith.constant 0 : index
    %c0_20 = arith.constant 0 : index
    %32 = vector.load %arg8[%c0_18, %c0_19, %c0_20] : memref<1x6x128xf32, #tpu.memory_space<vmem>>, vector<1x3x128xf32>
    %33 = vector.shape_cast %32 : vector<1x3x128xf32> to vector<3x128xf32>
    %34 = vector.shape_cast %31 : vector<3x128xf32> to vector<1x3x128xf32>
    tpu.vector_store %arg8[%c0_18, %c0_19, %c0_20], %34 {strides = array<i32>} : memref<1x6x128xf32, #tpu.memory_space<vmem>>, vector<1x3x128xf32>,
    %c0_21 = arith.constant 0 : index
    %c3 = arith.constant 3 : index
    %c0_22 = arith.constant 0 : index
    %35 = vector.load %arg8[%c0_21, %c3, %c0_22] : memref<1x6x128xf32, #tpu.memory_space<vmem>>, vector<1x3x128xf32>
    %36 = vector.shape_cast %35 : vector<1x3x128xf32> to vector<3x128xf32>
    %37 = vector.shape_cast %14 : vector<3x128xf32> to vector<1x3x128xf32>
    tpu.vector_store %arg8[%c0_21, %c3, %c0_22], %37 {strides = array<i32>} : memref<1x6x128xf32, #tpu.memory_space<vmem>>, vector<1x3x128xf32>,
    return
  }
  func.func @transform_0(%arg0: i32, %arg1: i32) -> (i32, i32, i32) {
    %c0_i32 = arith.constant 0 : i32
    %c0_i32_0 = arith.constant 0 : i32
    return %arg0, %c0_i32, %arg1 : i32, i32, i32
  }
  func.func @transform_1(%arg0: i32, %arg1: i32) -> (i32, i32, i32) {
    %c0_i32 = arith.constant 0 : i32
    %c0_i32_0 = arith.constant 0 : i32
    return %arg0, %c0_i32, %arg1 : i32, i32, i32
  }
  func.func @transform_2(%arg0: i32, %arg1: i32) -> (i32, i32) {
    %c0_i32 = arith.constant 0 : i32
    %c0_i32_0 = arith.constant 0 : i32
    %c0_i32_1 = arith.constant 0 : i32
    return %c0_i32, %c0_i32_0 : i32, i32
  }
  func.func @transform_3(%arg0: i32, %arg1: i32) -> (i32, i32) {
    %c0_i32 = arith.constant 0 : i32
    %c0_i32_0 = arith.constant 0 : i32
    %c0_i32_1 = arith.constant 0 : i32
    return %c0_i32, %c0_i32_0 : i32, i32
  }
  func.func @transform_4(%arg0: i32, %arg1: i32) -> (i32, i32) {
    %c0_i32 = arith.constant 0 : i32
    %c0_i32_0 = arith.constant 0 : i32
    %c0_i32_1 = arith.constant 0 : i32
    return %c0_i32, %c0_i32_0 : i32, i32
  }
  func.func @transform_5(%arg0: i32, %arg1: i32) -> (i32, i32) {
    %c0_i32 = arith.constant 0 : i32
    %c0_i32_0 = arith.constant 0 : i32
    %c0_i32_1 = arith.constant 0 : i32
    return %c0_i32, %c0_i32_0 : i32, i32
  }
  func.func @transform_6(%arg0: i32, %arg1: i32) -> (i32, i32, i32) {
    %c0_i32 = arith.constant 0 : i32
    %c0_i32_0 = arith.constant 0 : i32
    return %arg0, %c0_i32, %arg1 : i32, i32, i32
  }
}

</mosaic_0001>

<bundles_post_ra>
// kernel: tpu_custom_call.1
= control target key start
LH: loop header
LB: loop body
LE: loop exit
PB: predicated region body
PF: predicated region fallthrough
CT: control target
= control target key end

     0   :  { %11 = vsyncpa [#allocation3], 0  ;;  %s1057_s0 = inlined_call_operand.vmem [shape: f32[2,3,128], index: 0, kind: input, shape index: {}]   ;;  %s1058_s1 = inlined_call_operand.hbm [shape: f32[2,64,128], index: 1, kind: input, shape index: {}]   ;;  %s1059_s2 = inlined_call_operand.vmem [shape: f32[32,64], index: 2, kind: input, shape index: {}]   ;;  %s1060_s3 = inlined_call_operand.vmem [shape: f32[32,1], index: 3, kind: input, shape index: {}]   ;;  %s1061_s4 = inlined_call_operand.vmem [shape: f32[3,32], index: 4, kind: input, shape index: {}]   ;;  %s1062_s5 = inlined_call_operand.vmem [shape: f32[3,2], index: 5, kind: input, shape index: {}]   ;;  %s1063_s6 = inlined_call_operand.vmem [shape: f32[2,6,128], index: 6, kind: output, shape index: {}]  }
   0x1   :  { %13 = vsyncpa [#allocation3 + $0x1], 0  ;;  %s914_s21 = smov 0   ;;  %s916_s22 = smov 0  }
   0x2   :  { %s918_s23 = smov 0   ;;  %s920_s24 = smov 0  }
   0x3   :  { %s922_s25 = smov 0   ;;  %s924_s26 = smov 0  }
   0x4 LB: > { %s658_s27 = sadd.s32 4294967295, %s870_s26   ;;  %s31_s28 = sadd.s32 1, %s866_s25  ;;  %s870_s26 = sphi %s924_s26, %s19_s26   ;;  %s866_s25 = sphi %s922_s25, %s1071_s25   ;;  %s862_s24 = sphi %s920_s24, %s1070_s24   ;;  %s858_s23 = sphi %s918_s23, %s1069_s23   ;;  %s854_s22 = sphi %s916_s22, %s1068_s22   ;;  %s850_s21 = sphi %s914_s21, %s1067_s21  }
   0x5   : > { %p33_p0 = scmp.ge.s32.totalorder %s31_s28, 2  ;;  %s68_s29 = sadd.s32 1, %s858_s23 }
   0x6   : > { %p75_p1 = scmp.ne.s32.totalorder %s858_s23, %s854_s22  ;;  %p76_p2 = scmp.eq.s32.totalorder %s870_s26, 0 }
   0x7   : > { %s1073_s28 = smov (%p33_p0, %s31_s28), 0  ;;  %p81_p4 = scmp.ne.s32.totalorder %s854_s22, %s850_s21 }
   0x8   : > { %p950_p3 = por %p76_p2, %p75_p1  ;;  %s63_s7 = ssub.s32 %s866_s25, %s1073_s28 }
   0x9   : > { %p82_p5 = scmp.eq.s32.totalorder %s658_s27, 0  ;;  %p66_p6 = scmp.eq.s32.totalorder %s63_s7, 0 }
   0xa   : > { %p733_p8 = scmp.lt.s32.totalorder %s870_s26, 2  ;;  %s239_s10 = sand.u32 1, %s858_s23  }
   0xb   : > { %p957_p7 = por %p82_p5, %p81_p4  ;;  %s676_s11 = sshll.u32 %s866_s25, 10 }
   0xc   : > { %s963_s9 = scalar_select %p66_p6, %s858_s23, %s68_s29  }
   0xd   : > { %s662_s12 = sshll.u32 %s239_s10, 6  ;;  %s250_s15 = scalar_lea.hbm %s1058_s1, %s676_s11 }
   0xe   : > { %s243_s16 = scalar_lea.vmem [#allocation2], %s662_s12  ;;  %p972_p9 = pnand %p733_p8, %p950_p3 }
   0xf   : > { %s251_s17 = sshll.u32 %s243_s16, 4  ;;  %s240_s19 = scalar_lea.sflag [#allocation3], %s239_s10  ;;  %s252_s17 = int_to_ptr.vmem [resolvable:$true] %s251_s17 }
  0x10   : > { %p794_p10 = pneg %p972_p9  ;;  %s805_s20 = scalar_lea.vmem %s252_s17, 1024 }
  0x11   : > { %p806_p11 = scmp.ne.s32.totalorder %s252_s17, %s805_s20  ;;  %s872_s21 = smov [#allocation2]  }
  0x12   : > { %s810_s27 = sshll.u32 %s872_s21, 4  ;;  %s811_s27 = int_to_ptr.vmem [resolvable:$false] %s810_s27 }
  0x13   : > { %p808_p12 = pnand %p806_p11, %p794_p10  ;;  %s812_s29 = scalar_lea.vmem %s811_s27, 2048 }
  0x14   : > { %p813_p0 = scmp.lt.s32.totalorder %s252_s17, %s811_s27  ;;  %p814_p1 = scmp.lt.s32.totalorder %s812_s29, %s805_s20 }
  0x15   : > { %p809_p13 = pneg %p808_p12 }
  0x16   : > { %p815_p2 = por %p814_p1, %p813_p0 }
  0x18   : > { %p816_p3 = pnand %p815_p2, %p809_p13 }
  0x1a   : > { %819 = shalt.err (!%p816_p3)
}
  0x1b   : > { %s873_s30 = smov 128   ;;  %s874_s7 = smov 8  }
  0x1c   : > { %732 = dma.hbm_to_vmem [thread:$0]  (!%p972_p9), %s250_s15, 1024, %s252_s17, %s240_s19, %s873_s30, %s873_s30, %s874_s7  }
  0x1d   : > { %p665_p4 = scmp.ge.s32.totalorder %s870_s26, 1  ;;  %p259_p5 = scmp.lt.s32.totalorder %s870_s26, 3 }
  0x1f   : > { %p260_p6 = pnand %p665_p4, %p259_p5 }
  0x20   : > { %s265_s10 = sand.u32 (!%p260_p6), 1, %s854_s22  }
  0x21   : > { %263 = sbr.rel (%p260_p6) target bundleno = 467 (0x1d3), region = 44  ;;  %s666_s11 = sshll.u32 (!%p260_p6), %s265_s10, 6 }
  0x22   : > { %s266_s12 = scalar_lea.sflag (!%p260_p6), [#allocation3], %s265_s10  ;;  %s983_s13 = scalar_lea.vmem (!%p260_p6), [#allocation2], %s666_s11 }
  0x26   : > { %845 = dma.done.wait (%p957_p7), %s266_s12, 1024  }
  0x27   : > { %847 = vsyncadd (%p957_p7), %s266_s12, 4294966272  ;;  %v875_v0 = vmov 0   ;;  %v338_v1 = vld [vmem:[%s983_s13 + $0x38] sm:$0xff]  ;;  %v337_v2 = vld [vmem:[%s983_s13 + $0x30] sm:$0xff]  ;;  %vm359_vm0 = vcmask 523264   ;;  %v876_v18 = vmov 0.0  }
  0x28   : > { %788 = vset.pattern.permute.xlu0 %v875_v0  ;;  %789 = vset.pattern.permute.xlu1 %v875_v0  ;;  %v336_v3 = vld [vmem:[%s983_s13 + $0x28] sm:$0xff]  ;;  %v321_v4 = vld [vmem:[%s1059_s2] sm:$0xff]  ;;  %v328_v6 = vld [vmem:[%s1060_s3 + $0x18] sm:$0xff]  ;;  %vm877_vm1 = vmmov 0   ;;  %v878_v20 = vmov 1   ;;  %vm466_vm2 = vcmask 261120  }
  0x29   : > { %694 = vmatprep.subr.mxu0 %v338_v1  ;;  %710 = vmatprep.mubr.msk.f32.mxu0 %vm359_vm0, %v321_v4  ;;  %v335_v5 = vld [vmem:[%s983_s13 + $0x20] sm:$0xff]  ;;  %v326_v7 = vld [vmem:[%s1060_s3 + $0x8] sm:$0xff]  ;;  %v334_v8 = vld [vmem:[%s983_s13 + $0x18] sm:$0xff]  ;;  %p307_p7 = scmp.lt.s32.totalorder %s862_s24, 1 }
  0x2a   : > { %695 = vmatpush3.msra.mxu0 %v338_v1  ;;  %356 = vperm.xlu0 %788, %v328_v6   ;;  %v327_v9 = vld [vmem:[%s1060_s3 + $0x10] sm:$0xff]  ;;  %v325_v10 = vld [vmem:[%s1060_s3] sm:$0xff]  ;;  %v332_v12 = vld [vmem:[%s983_s13 + $0x8] sm:$0xff] }
  0x2b   : > { %696 = vmatprep.subr.mxu0 %v337_v2  ;;  %346 = vperm.xlu1 %789, %v326_v7   ;;  %v333_v11 = vld [vmem:[%s983_s13 + $0x10] sm:$0xff]  ;;  %v330_v13 = vld [vmem:[%s1062_s5] sm:$0x7]  ;;  %v322_v15 = vld [vmem:[%s1059_s2 + $0x8] sm:$0xff]  ;;  %s1075_s24 = smov (!%p307_p7, %s862_s24), 1 }
  0x2c   : > { %697 = vmatpush3.msra.mxu0 %v337_v2  ;;  %v331_v14 = vld [vmem:[%s983_s13] sm:$0xff]  ;;  %v323_v16 = vld [vmem:[%s1059_s2 + $0x10] sm:$0xff]  ;;  %v324_v17 = vld [vmem:[%s1059_s2 + $0x18] sm:$0xff]  ;;  %716 = vmatprep.subr.mxu1 %v876_v18  ;;  %v546_v19 = vsub.f32 0.0, %v330_v13  ;;  %s668_s16 = sshll.u32 %s1075_s24, 3  ;;  %s667_s17 = sshll.u32 %s1075_s24, 2 }
  0x2d   : > { %698 = vmatprep.subr.mxu0 %v336_v3  ;;  %724 = vmatprep.mubr.msk.f32.mxu1 %vm877_vm1, %v876_v18  ;;  %v329_v37 = vld [vmem:[%s1061_s4] sm:$0x7]  ;;  %s320_s20 = scalar_lea.vmem %s1063_s6, %s668_s16  ;;  %s313_s29 = scalar_lea.vmem %s1057_s0, %s667_s17 }
  0x2e   : > { %699 = vmatpush3.msra.mxu0 %v336_v3  ;;  %351 = vperm.xlu0 %788, %v327_v9   ;;  %v554_v44 = vld [vmem:[%s313_s29] sm:$0x7] }
  0x2f   : > { %700 = vmatprep.subr.mxu0 %v335_v5  ;;  %341 = vperm.xlu1 %789, %v325_v10  }
  0x30   : > { %701 = vmatpush3.msra.mxu0 %v335_v5 }
  0x31   : > { %702 = vmatprep.subr.mxu0 %v334_v8 }
  0x32   : > { %703 = vmatpush3.msra.mxu0 %v334_v8  ;;  %463 = vperm.xlu0 %788, %v330_v13  }
  0x33   : > { %704 = vmatprep.subr.mxu0 %v333_v11  ;;  %790 = vset.pattern.permute.xlu1 %v878_v20 }
  0x34   : > { %705 = vmatpush3.msra.mxu0 %v333_v11  ;;  %541 = vperm.xlu1 %790, %v330_v13  }
  0x35   : > { %706 = vmatprep.subr.mxu0 %v332_v12 }
  0x36   : > { %707 = vmatpush3.msra.mxu0 %v332_v12  ;;  %791 = vset.pattern.permute.xlu0 %v878_v20 }
  0x37   : > { %708 = vmatprep.subr.mxu0 %v331_v14  ;;  %549 = vperm.xlu0 %791, %v546_v19  }
  0x38   : > { %709 = vmatpush3.msra.mxu0 %v331_v14 }
  0x39   : > { %711 = vmatmul.mubr.msk.f32.vlgmr.msra.gmra.mxu0 %vm359_vm0, %v322_v15 }
  0x3a   : > { %713 = vmatprep.mubr.msk.f32.mxu0 %vm359_vm0, %v323_v16 }
  0x3d   : > { %714 = vmatmul.mubr.msk.f32.gmra.mxu0 %vm359_vm0, %v324_v17 }
  0xa5   : > { %v357_v21 = vpop.permute.xlu0 %356 }
  0xa6   : > { %v347_v22 = vpop.permute.xlu1 %346 }
  0xa9   : > { %v352_v26 = vpop.permute.xlu0 %351 }
  0xaa   : > { %v342_v28 = vpop.permute.xlu1 %341 }
  0xad   : > { %v464_v38 = vpop.permute.xlu0 %463 }
  0xaf   : > { %v542_v40 = vpop.permute.xlu1 %541 }
  0xb2   : > { %v550_v43 = vpop.permute.xlu0 %549 }
  0xf9   : > { %v712_v23 = vpop.f32.mrf.mxu0 }
  0xfa   : > { %v444_v30 = vadd.f32 %v712_v23, %v347_v22 }
  0xfb   : > { %v438_v24 = vpop.f32.mrf.mxu0 }
  0xfc   : > { %v439_v33 = vadd.f32 %v438_v24, %v342_v28  ;;  %v458_v35 = vmax.f32 %v444_v30, 0.0 }
  0xfd   : > { %v715_v25 = vpop.f32.mrf.mxu0 }
  0xfe   : > { %v454_v27 = vadd.f32 %v715_v25, %v357_v21  ;;  %v457_v36 = vmax.f32 %v439_v33, 0.0 }
  0xff   : > { %v448_v29 = vpop.f32.mrf.mxu0 }
 0x100   : > { %v460_v31 = vmax.f32 %v454_v27, 0.0  ;;  %v449_v32 = vadd.f32 %v448_v29, %v352_v26 }
 0x102   : > { %v459_v34 = vmax.f32 %v449_v32, 0.0  ;;  %717 = vmatpush3.msra.mxu1 %v460_v31 }
 0x103   : > { %718 = vmatprep.subr.mxu1 %v876_v18 }
 0x104   : > { %719 = vmatpush3.msra.mxu1 %v459_v34 }
 0x105   : > { %720 = vmatprep.subr.mxu1 %v876_v18 }
 0x106   : > { %721 = vmatpush3.msra.mxu1 %v458_v35 }
 0x107   : > { %722 = vmatprep.subr.mxu1 %v876_v18 }
 0x108   : > { %723 = vmatpush3.msra.mxu1 %v457_v36 }
 0x109   : > { %725 = vmatmul.mubr.msk.f32.vlgmr.msra.gmra.mxu1 %vm466_vm2, %v329_v37 }
 0x1c9   : > { %v536_v39 = vpop.f32.mrf.mxu1 }
 0x1ca   : > { %v537_v41 = vadd.f32 %v536_v39, %v464_v38 }
 0x1cb   : > { %v726_v42 = vpop.f32.mrf.mxu1 }
 0x1cc   : > { %557 = vst [vmem:[%s320_s20 + $0x3] sm:$0x7] %v537_v41  ;;  %vm544_vm3 = vcmp.gt.f32.partialorder %v537_v41, %v542_v40 }
 0x1cd   : > { %v545_v45 = vsel %vm544_vm3, %v542_v40, %v537_v41 }
 0x1ce   : > { %vm552_vm4 = vcmp.lt.f32.partialorder %v545_v45, %v550_v43 }
 0x1cf   : > { %v553_v46 = vsel %vm552_vm4, %v550_v43, %v545_v45 }
 0x1d0   : > { %v555_v47 = vadd.f32 %v554_v44, %v553_v46 }
 0x1d2   : > { %556 = vst [vmem:[%s320_s20] sm:$0x7] %v555_v47 }
 0x1d3 PF: > { %s19_s26 = sadd.s32 1, %s870_s26   ;;  %s1067_s21 = smov %s854_s22 }
 0x1d4   : > { %p16_p8 = scmp.ge.s32.totalorder %s19_s26, 4   ;;  %s1068_s22 = smov %s858_s23 }
 0x1d5   : > { %s1069_s23 = smov %s963_s9  ;;  %s1070_s24 = smov %s866_s25 }
 0x1d6   : > { %s1071_s25 = smov %s1073_s28  ;;  %18 = sbr.rel (!%p16_p8) target bundleno = 4 (0x4), region = 87 }
 0x1db   :  { %583 = vsyncpa [#allocation3], 1 }
 0x1dc   :  { %585 = vsyncpa [#allocation3 + $0x1], 1 }

</bundles_post_ra>
